<compile_context>
chip_gen: v7x
topology: tpu7x:2x2x1
jax: 0.10.0
libtpu: 0.0.40
codegen_flags: <defaults>
</compile_context>

<pallas_src>
import jax
import jax.numpy as jnp
from jax.experimental import pallas as pl
from jax.experimental.pallas import tpu as pltpu

_LANES = 128

# Offsets of the packed parameter slab (row-major flattening, weights stored as (in, out)).
_W1, _B1 = 0, 4          # w1: (1,4)  -> [0:4),   b1: [4:8)
_W2, _B2 = 8, 72         # w2: (4,16) -> [8:72),  b2: [72:88)
_W3, _B3 = 88, 120       # w3: (16,2) -> [88:120), b3: [120:122)


def _decoder_kernel(w_ref, z_ref, o_ref):
    # w_ref: (128,) f32 in SMEM (packed params); z_ref: (block_rows, 128) lane-dense batch tile.
    z = z_ref[...]                                                  # (bR, 128) f32

    # Layer 1: Linear(1, 4) + ReLU   -> h1[c] = relu(z * w1[0,c] + b1[c])
    h1 = [jnp.maximum(z * w_ref[_W1 + c] + w_ref[_B1 + c], 0.0) for c in range(4)]

    # Layers 2 + 3 fused: for each hidden unit j, compute h2_j = relu(sum_c h1[c]*w2[c,j] + b2[j])
    # and immediately fold it into the two output accumulators, then discard it.
    acc0 = None
    acc1 = None
    for j in range(16):
        t = h1[0] * w_ref[_W2 + j] + w_ref[_B2 + j]
        t = t + h1[1] * w_ref[_W2 + 16 + j]
        t = t + h1[2] * w_ref[_W2 + 32 + j]
        t = t + h1[3] * w_ref[_W2 + 48 + j]
        h2j = jnp.maximum(t, 0.0)
        if j == 0:
            acc0 = h2j * w_ref[_W3 + 0] + w_ref[_B3 + 0]
            acc1 = h2j * w_ref[_W3 + 1] + w_ref[_B3 + 1]
        else:
            acc0 = acc0 + h2j * w_ref[_W3 + 2 * j + 0]
            acc1 = acc1 + h2j * w_ref[_W3 + 2 * j + 1]

    o_ref[0, :, :] = acc0                                           # lane-dense, unmasked stores
    o_ref[1, :, :] = acc1


def _pack_params(p):
    """Pack all weights/biases (122 f32 values) into a single (128,) f32 slab."""
    flat = jnp.concatenate([
        p["w1"].reshape(-1), p["b1"].reshape(-1),   # [0:4), [4:8)
        p["w2"].reshape(-1), p["b2"].reshape(-1),   # [8:72), [72:88)
        p["w3"].reshape(-1), p["b3"].reshape(-1),   # [88:120), [120:122)
    ]).astype(jnp.float32)
    return jnp.pad(flat, (0, _LANES - flat.shape[0]))


def _round_up(x, m):
    return -(-x // m) * m


def decoder_forward(z, params):
    """z: (B, 1) float32. params: dict of w1,b1,w2,b2,w3,b3 with (in, out) weight layout."""
    B = z.shape[0]
    w_packed = _pack_params(params)                                 # (128,) f32 -> SMEM

    # --- batch tiling policy ---------------------------------------------------------------
    rows = _round_up(B, _LANES) // _LANES                           # lane-rows needed
    rows8 = _round_up(rows, 8)                                      # sublane-aligned row count
    if rows8 <= 8:
        block_rows = rows8                                          # single tiny block
    else:
        # Aim for >=2 grid steps (v7x dual-TC megacore) and cap the block at 1024 rows
        # (~0.5 MiB input + ~1 MiB output per block; trivially under any VMEM budget).
        block_rows = min(_round_up(rows8, 16) // 2, 1024)
        block_rows = _round_up(block_rows, 8)
    rows_p = _round_up(rows8, block_rows)
    grid = (rows_p // block_rows,)

    # Lane-dense batch layout: flatten, pad only if needed, reshape to (rows_p, 128).
    total = rows_p * _LANES
    z_flat = z.reshape(-1).astype(jnp.float32)
    if B == total:
        z_lanes = z_flat.reshape(rows_p, _LANES)
    else:
        z_lanes = jnp.pad(z_flat, (0, total - B)).reshape(rows_p, _LANES)

    out = pl.pallas_call(
        _decoder_kernel,
        out_shape=jax.ShapeDtypeStruct((2, rows_p, _LANES), jnp.float32),
        grid=grid,
        in_specs=[
            # Single packed parameter slab, resident in SMEM for the whole kernel (1 tiny DMA).
            pl.BlockSpec(memory_space=pltpu.MemorySpace.SMEM),
            # Lane-dense batch tile, pipelined over the grid.
            pl.BlockSpec((block_rows, _LANES), lambda i: (i, 0)),
        ],
        out_specs=pl.BlockSpec((2, block_rows, _LANES), lambda i: (0, i, 0)),
        compiler_params=pltpu.CompilerParams(
            dimension_semantics=("parallel",)),                     # megacore sharding on v7x
    )(w_packed, z_lanes)

    # (2, rows_p, 128) -> (2, rows_p*128) -> drop padding -> (B, 2).
    # The .T is kept only to honor the module's (B, 2) output contract.
    return out.reshape(2, total)[:, :B].T


def init_params(key):
    """Deterministic init mimicking nn.Linear shapes (weights stored transposed: (in, out))."""
    ks = jax.random.split(key, 6)

    def lin(kw, kb, fan_in, fan_out):
        bound = 1.0 / jnp.sqrt(fan_in)
        w = jax.random.uniform(kw, (fan_in, fan_out), jnp.float32, -bound, bound)
        b = jax.random.uniform(kb, (1, fan_out), jnp.float32, -bound, bound)
        return w, b

    w1, b1 = lin(ks[0], ks[1], 1, 4)
    w2, b2 = lin(ks[2], ks[3], 4, 16)
    w3, b3 = lin(ks[4], ks[5], 16, 2)
    return {"w1": w1, "b1": b1, "w2": w2, "b2": b2, "w3": w3, "b3": b3}


def decoder_reference(z, p):
    h1 = jnp.maximum(z @ p["w1"] + p["b1"], 0.0)
    h2 = jnp.maximum(h1 @ p["w2"] + p["b2"], 0.0)
    return h2 @ p["w3"] + p["b3"]


if __name__ == "__main__":
    key = jax.random.PRNGKey(0)
    kp, kz = jax.random.split(key)
    params = init_params(kp)

    B = 8
    z = jax.random.normal(kz, (B, 1), jnp.float32)   # latent input, shape (batch, 1)

    out = jax.block_until_ready(decoder_forward(z, params))
    ref = decoder_reference(z, params)

    assert out.shape == (B, 2)
    assert jnp.allclose(out, ref, atol=1e-5, rtol=1e-5)
    print("KERNEL_OK")
</pallas_src>

<mosaic_0001>
module attributes {stable_mosaic.version = 11 : i64} {
  func.func @_decoder_kernel(%arg0: i32, %arg1: memref<128xf32, #tpu.memory_space<smem>>, %arg2: memref<8x128xf32, #tpu.memory_space<vmem>>, %arg3: memref<2x8x128xf32, #tpu.memory_space<vmem>>) attributes {dimension_semantics = [#tpu.dimension_semantics<parallel>], iteration_bounds = array<i64: 1>, scalar_prefetch = 0 : i64, scratch_operands = 0 : i64, tpu.core_type = #tpu.core_type<tc>, window_params = [{transform_indices = @transform_0, window_bounds = array<i64: 128>}, {transform_indices = @transform_1, window_bounds = array<i64: 8, 128>}, {transform_indices = @transform_2, window_bounds = array<i64: 2, 8, 128>}]} {
    %c0 = arith.constant 0 : index
    %c0_0 = arith.constant 0 : index
    %0 = vector.load %arg2[%c0, %c0_0] : memref<8x128xf32, #tpu.memory_space<vmem>>, vector<8x128xf32>
    %c0_1 = arith.constant 0 : index
    %1 = memref.load %arg1[%c0_1] : memref<128xf32, #tpu.memory_space<smem>>
    %2 = vector.broadcast %1 : f32 to vector<8x128xf32>
    %3 = arith.mulf %0, %2 : vector<8x128xf32>
    %c4 = arith.constant 4 : index
    %4 = memref.load %arg1[%c4] : memref<128xf32, #tpu.memory_space<smem>>
    %5 = vector.broadcast %4 : f32 to vector<8x128xf32>
    %6 = arith.addf %3, %5 : vector<8x128xf32>
    %cst = arith.constant 0.000000e+00 : f32
    %7 = vector.broadcast %cst : f32 to vector<8x128xf32>
    %8 = arith.maximumf %6, %7 : vector<8x128xf32>
    %c1 = arith.constant 1 : index
    %9 = memref.load %arg1[%c1] : memref<128xf32, #tpu.memory_space<smem>>
    %10 = vector.broadcast %9 : f32 to vector<8x128xf32>
    %11 = arith.mulf %0, %10 : vector<8x128xf32>
    %c5 = arith.constant 5 : index
    %12 = memref.load %arg1[%c5] : memref<128xf32, #tpu.memory_space<smem>>
    %13 = vector.broadcast %12 : f32 to vector<8x128xf32>
    %14 = arith.addf %11, %13 : vector<8x128xf32>
    %cst_2 = arith.constant 0.000000e+00 : f32
    %15 = vector.broadcast %cst_2 : f32 to vector<8x128xf32>
    %16 = arith.maximumf %14, %15 : vector<8x128xf32>
    %c2 = arith.constant 2 : index
    %17 = memref.load %arg1[%c2] : memref<128xf32, #tpu.memory_space<smem>>
    %18 = vector.broadcast %17 : f32 to vector<8x128xf32>
    %19 = arith.mulf %0, %18 : vector<8x128xf32>
    %c6 = arith.constant 6 : index
    %20 = memref.load %arg1[%c6] : memref<128xf32, #tpu.memory_space<smem>>
    %21 = vector.broadcast %20 : f32 to vector<8x128xf32>
    %22 = arith.addf %19, %21 : vector<8x128xf32>
    %cst_3 = arith.constant 0.000000e+00 : f32
    %23 = vector.broadcast %cst_3 : f32 to vector<8x128xf32>
    %24 = arith.maximumf %22, %23 : vector<8x128xf32>
    %c3 = arith.constant 3 : index
    %25 = memref.load %arg1[%c3] : memref<128xf32, #tpu.memory_space<smem>>
    %26 = vector.broadcast %25 : f32 to vector<8x128xf32>
    %27 = arith.mulf %0, %26 : vector<8x128xf32>
    %c7 = arith.constant 7 : index
    %28 = memref.load %arg1[%c7] : memref<128xf32, #tpu.memory_space<smem>>
    %29 = vector.broadcast %28 : f32 to vector<8x128xf32>
    %30 = arith.addf %27, %29 : vector<8x128xf32>
    %cst_4 = arith.constant 0.000000e+00 : f32
    %31 = vector.broadcast %cst_4 : f32 to vector<8x128xf32>
    %32 = arith.maximumf %30, %31 : vector<8x128xf32>
    %c8 = arith.constant 8 : index
    %33 = memref.load %arg1[%c8] : memref<128xf32, #tpu.memory_space<smem>>
    %34 = vector.broadcast %33 : f32 to vector<8x128xf32>
    %35 = arith.mulf %8, %34 : vector<8x128xf32>
    %c72 = arith.constant 72 : index
    %36 = memref.load %arg1[%c72] : memref<128xf32, #tpu.memory_space<smem>>
    %37 = vector.broadcast %36 : f32 to vector<8x128xf32>
    %38 = arith.addf %35, %37 : vector<8x128xf32>
    %c24 = arith.constant 24 : index
    %39 = memref.load %arg1[%c24] : memref<128xf32, #tpu.memory_space<smem>>
    %40 = vector.broadcast %39 : f32 to vector<8x128xf32>
    %41 = arith.mulf %16, %40 : vector<8x128xf32>
    %42 = arith.addf %38, %41 : vector<8x128xf32>
    %c40 = arith.constant 40 : index
    %43 = memref.load %arg1[%c40] : memref<128xf32, #tpu.memory_space<smem>>
    %44 = vector.broadcast %43 : f32 to vector<8x128xf32>
    %45 = arith.mulf %24, %44 : vector<8x128xf32>
    %46 = arith.addf %42, %45 : vector<8x128xf32>
    %c56 = arith.constant 56 : index
    %47 = memref.load %arg1[%c56] : memref<128xf32, #tpu.memory_space<smem>>
    %48 = vector.broadcast %47 : f32 to vector<8x128xf32>
    %49 = arith.mulf %32, %48 : vector<8x128xf32>
    %50 = arith.addf %46, %49 : vector<8x128xf32>
    %cst_5 = arith.constant 0.000000e+00 : f32
    %51 = vector.broadcast %cst_5 : f32 to vector<8x128xf32>
    %52 = arith.maximumf %50, %51 : vector<8x128xf32>
    %c88 = arith.constant 88 : index
    %53 = memref.load %arg1[%c88] : memref<128xf32, #tpu.memory_space<smem>>
    %54 = vector.broadcast %53 : f32 to vector<8x128xf32>
    %55 = arith.mulf %52, %54 : vector<8x128xf32>
    %c120 = arith.constant 120 : index
    %56 = memref.load %arg1[%c120] : memref<128xf32, #tpu.memory_space<smem>>
    %57 = vector.broadcast %56 : f32 to vector<8x128xf32>
    %58 = arith.addf %55, %57 : vector<8x128xf32>
    %c89 = arith.constant 89 : index
    %59 = memref.load %arg1[%c89] : memref<128xf32, #tpu.memory_space<smem>>
    %60 = vector.broadcast %59 : f32 to vector<8x128xf32>
    %61 = arith.mulf %52, %60 : vector<8x128xf32>
    %c121 = arith.constant 121 : index
    %62 = memref.load %arg1[%c121] : memref<128xf32, #tpu.memory_space<smem>>
    %63 = vector.broadcast %62 : f32 to vector<8x128xf32>
    %64 = arith.addf %61, %63 : vector<8x128xf32>
    %c9 = arith.constant 9 : index
    %65 = memref.load %arg1[%c9] : memref<128xf32, #tpu.memory_space<smem>>
    %66 = vector.broadcast %65 : f32 to vector<8x128xf32>
    %67 = arith.mulf %8, %66 : vector<8x128xf32>
    %c73 = arith.constant 73 : index
    %68 = memref.load %arg1[%c73] : memref<128xf32, #tpu.memory_space<smem>>
    %69 = vector.broadcast %68 : f32 to vector<8x128xf32>
    %70 = arith.addf %67, %69 : vector<8x128xf32>
    %c25 = arith.constant 25 : index
    %71 = memref.load %arg1[%c25] : memref<128xf32, #tpu.memory_space<smem>>
    %72 = vector.broadcast %71 : f32 to vector<8x128xf32>
    %73 = arith.mulf %16, %72 : vector<8x128xf32>
    %74 = arith.addf %70, %73 : vector<8x128xf32>
    %c41 = arith.constant 41 : index
    %75 = memref.load %arg1[%c41] : memref<128xf32, #tpu.memory_space<smem>>
    %76 = vector.broadcast %75 : f32 to vector<8x128xf32>
    %77 = arith.mulf %24, %76 : vector<8x128xf32>
    %78 = arith.addf %74, %77 : vector<8x128xf32>
    %c57 = arith.constant 57 : index
    %79 = memref.load %arg1[%c57] : memref<128xf32, #tpu.memory_space<smem>>
    %80 = vector.broadcast %79 : f32 to vector<8x128xf32>
    %81 = arith.mulf %32, %80 : vector<8x128xf32>
    %82 = arith.addf %78, %81 : vector<8x128xf32>
    %cst_6 = arith.constant 0.000000e+00 : f32
    %83 = vector.broadcast %cst_6 : f32 to vector<8x128xf32>
    %84 = arith.maximumf %82, %83 : vector<8x128xf32>
    %c90 = arith.constant 90 : index
    %85 = memref.load %arg1[%c90] : memref<128xf32, #tpu.memory_space<smem>>
    %86 = vector.broadcast %85 : f32 to vector<8x128xf32>
    %87 = arith.mulf %84, %86 : vector<8x128xf32>
    %88 = arith.addf %58, %87 : vector<8x128xf32>
    %c91 = arith.constant 91 : index
    %89 = memref.load %arg1[%c91] : memref<128xf32, #tpu.memory_space<smem>>
    %90 = vector.broadcast %89 : f32 to vector<8x128xf32>
    %91 = arith.mulf %84, %90 : vector<8x128xf32>
    %92 = arith.addf %64, %91 : vector<8x128xf32>
    %c10 = arith.constant 10 : index
    %93 = memref.load %arg1[%c10] : memref<128xf32, #tpu.memory_space<smem>>
    %94 = vector.broadcast %93 : f32 to vector<8x128xf32>
    %95 = arith.mulf %8, %94 : vector<8x128xf32>
    %c74 = arith.constant 74 : index
    %96 = memref.load %arg1[%c74] : memref<128xf32, #tpu.memory_space<smem>>
    %97 = vector.broadcast %96 : f32 to vector<8x128xf32>
    %98 = arith.addf %95, %97 : vector<8x128xf32>
    %c26 = arith.constant 26 : index
    %99 = memref.load %arg1[%c26] : memref<128xf32, #tpu.memory_space<smem>>
    %100 = vector.broadcast %99 : f32 to vector<8x128xf32>
    %101 = arith.mulf %16, %100 : vector<8x128xf32>
    %102 = arith.addf %98, %101 : vector<8x128xf32>
    %c42 = arith.constant 42 : index
    %103 = memref.load %arg1[%c42] : memref<128xf32, #tpu.memory_space<smem>>
    %104 = vector.broadcast %103 : f32 to vector<8x128xf32>
    %105 = arith.mulf %24, %104 : vector<8x128xf32>
    %106 = arith.addf %102, %105 : vector<8x128xf32>
    %c58 = arith.constant 58 : index
    %107 = memref.load %arg1[%c58] : memref<128xf32, #tpu.memory_space<smem>>
    %108 = vector.broadcast %107 : f32 to vector<8x128xf32>
    %109 = arith.mulf %32, %108 : vector<8x128xf32>
    %110 = arith.addf %106, %109 : vector<8x128xf32>
    %cst_7 = arith.constant 0.000000e+00 : f32
    %111 = vector.broadcast %cst_7 : f32 to vector<8x128xf32>
    %112 = arith.maximumf %110, %111 : vector<8x128xf32>
    %c92 = arith.constant 92 : index
    %113 = memref.load %arg1[%c92] : memref<128xf32, #tpu.memory_space<smem>>
    %114 = vector.broadcast %113 : f32 to vector<8x128xf32>
    %115 = arith.mulf %112, %114 : vector<8x128xf32>
    %116 = arith.addf %88, %115 : vector<8x128xf32>
    %c93 = arith.constant 93 : index
    %117 = memref.load %arg1[%c93] : memref<128xf32, #tpu.memory_space<smem>>
    %118 = vector.broadcast %117 : f32 to vector<8x128xf32>
    %119 = arith.mulf %112, %118 : vector<8x128xf32>
    %120 = arith.addf %92, %119 : vector<8x128xf32>
    %c11 = arith.constant 11 : index
    %121 = memref.load %arg1[%c11] : memref<128xf32, #tpu.memory_space<smem>>
    %122 = vector.broadcast %121 : f32 to vector<8x128xf32>
    %123 = arith.mulf %8, %122 : vector<8x128xf32>
    %c75 = arith.constant 75 : index
    %124 = memref.load %arg1[%c75] : memref<128xf32, #tpu.memory_space<smem>>
    %125 = vector.broadcast %124 : f32 to vector<8x128xf32>
    %126 = arith.addf %123, %125 : vector<8x128xf32>
    %c27 = arith.constant 27 : index
    %127 = memref.load %arg1[%c27] : memref<128xf32, #tpu.memory_space<smem>>
    %128 = vector.broadcast %127 : f32 to vector<8x128xf32>
    %129 = arith.mulf %16, %128 : vector<8x128xf32>
    %130 = arith.addf %126, %129 : vector<8x128xf32>
    %c43 = arith.constant 43 : index
    %131 = memref.load %arg1[%c43] : memref<128xf32, #tpu.memory_space<smem>>
    %132 = vector.broadcast %131 : f32 to vector<8x128xf32>
    %133 = arith.mulf %24, %132 : vector<8x128xf32>
    %134 = arith.addf %130, %133 : vector<8x128xf32>
    %c59 = arith.constant 59 : index
    %135 = memref.load %arg1[%c59] : memref<128xf32, #tpu.memory_space<smem>>
    %136 = vector.broadcast %135 : f32 to vector<8x128xf32>
    %137 = arith.mulf %32, %136 : vector<8x128xf32>
    %138 = arith.addf %134, %137 : vector<8x128xf32>
    %cst_8 = arith.constant 0.000000e+00 : f32
    %139 = vector.broadcast %cst_8 : f32 to vector<8x128xf32>
    %140 = arith.maximumf %138, %139 : vector<8x128xf32>
    %c94 = arith.constant 94 : index
    %141 = memref.load %arg1[%c94] : memref<128xf32, #tpu.memory_space<smem>>
    %142 = vector.broadcast %141 : f32 to vector<8x128xf32>
    %143 = arith.mulf %140, %142 : vector<8x128xf32>
    %144 = arith.addf %116, %143 : vector<8x128xf32>
    %c95 = arith.constant 95 : index
    %145 = memref.load %arg1[%c95] : memref<128xf32, #tpu.memory_space<smem>>
    %146 = vector.broadcast %145 : f32 to vector<8x128xf32>
    %147 = arith.mulf %140, %146 : vector<8x128xf32>
    %148 = arith.addf %120, %147 : vector<8x128xf32>
    %c12 = arith.constant 12 : index
    %149 = memref.load %arg1[%c12] : memref<128xf32, #tpu.memory_space<smem>>
    %150 = vector.broadcast %149 : f32 to vector<8x128xf32>
    %151 = arith.mulf %8, %150 : vector<8x128xf32>
    %c76 = arith.constant 76 : index
    %152 = memref.load %arg1[%c76] : memref<128xf32, #tpu.memory_space<smem>>
    %153 = vector.broadcast %152 : f32 to vector<8x128xf32>
    %154 = arith.addf %151, %153 : vector<8x128xf32>
    %c28 = arith.constant 28 : index
    %155 = memref.load %arg1[%c28] : memref<128xf32, #tpu.memory_space<smem>>
    %156 = vector.broadcast %155 : f32 to vector<8x128xf32>
    %157 = arith.mulf %16, %156 : vector<8x128xf32>
    %158 = arith.addf %154, %157 : vector<8x128xf32>
    %c44 = arith.constant 44 : index
    %159 = memref.load %arg1[%c44] : memref<128xf32, #tpu.memory_space<smem>>
    %160 = vector.broadcast %159 : f32 to vector<8x128xf32>
    %161 = arith.mulf %24, %160 : vector<8x128xf32>
    %162 = arith.addf %158, %161 : vector<8x128xf32>
    %c60 = arith.constant 60 : index
    %163 = memref.load %arg1[%c60] : memref<128xf32, #tpu.memory_space<smem>>
    %164 = vector.broadcast %163 : f32 to vector<8x128xf32>
    %165 = arith.mulf %32, %164 : vector<8x128xf32>
    %166 = arith.addf %162, %165 : vector<8x128xf32>
    %cst_9 = arith.constant 0.000000e+00 : f32
    %167 = vector.broadcast %cst_9 : f32 to vector<8x128xf32>
    %168 = arith.maximumf %166, %167 : vector<8x128xf32>
    %c96 = arith.constant 96 : index
    %169 = memref.load %arg1[%c96] : memref<128xf32, #tpu.memory_space<smem>>
    %170 = vector.broadcast %169 : f32 to vector<8x128xf32>
    %171 = arith.mulf %168, %170 : vector<8x128xf32>
    %172 = arith.addf %144, %171 : vector<8x128xf32>
    %c97 = arith.constant 97 : index
    %173 = memref.load %arg1[%c97] : memref<128xf32, #tpu.memory_space<smem>>
    %174 = vector.broadcast %173 : f32 to vector<8x128xf32>
    %175 = arith.mulf %168, %174 : vector<8x128xf32>
    %176 = arith.addf %148, %175 : vector<8x128xf32>
    %c13 = arith.constant 13 : index
    %177 = memref.load %arg1[%c13] : memref<128xf32, #tpu.memory_space<smem>>
    %178 = vector.broadcast %177 : f32 to vector<8x128xf32>
    %179 = arith.mulf %8, %178 : vector<8x128xf32>
    %c77 = arith.constant 77 : index
    %180 = memref.load %arg1[%c77] : memref<128xf32, #tpu.memory_space<smem>>
    %181 = vector.broadcast %180 : f32 to vector<8x128xf32>
    %182 = arith.addf %179, %181 : vector<8x128xf32>
    %c29 = arith.constant 29 : index
    %183 = memref.load %arg1[%c29] : memref<128xf32, #tpu.memory_space<smem>>
    %184 = vector.broadcast %183 : f32 to vector<8x128xf32>
    %185 = arith.mulf %16, %184 : vector<8x128xf32>
    %186 = arith.addf %182, %185 : vector<8x128xf32>
    %c45 = arith.constant 45 : index
    %187 = memref.load %arg1[%c45] : memref<128xf32, #tpu.memory_space<smem>>
    %188 = vector.broadcast %187 : f32 to vector<8x128xf32>
    %189 = arith.mulf %24, %188 : vector<8x128xf32>
    %190 = arith.addf %186, %189 : vector<8x128xf32>
    %c61 = arith.constant 61 : index
    %191 = memref.load %arg1[%c61] : memref<128xf32, #tpu.memory_space<smem>>
    %192 = vector.broadcast %191 : f32 to vector<8x128xf32>
    %193 = arith.mulf %32, %192 : vector<8x128xf32>
    %194 = arith.addf %190, %193 : vector<8x128xf32>
    %cst_10 = arith.constant 0.000000e+00 : f32
    %195 = vector.broadcast %cst_10 : f32 to vector<8x128xf32>
    %196 = arith.maximumf %194, %195 : vector<8x128xf32>
    %c98 = arith.constant 98 : index
    %197 = memref.load %arg1[%c98] : memref<128xf32, #tpu.memory_space<smem>>
    %198 = vector.broadcast %197 : f32 to vector<8x128xf32>
    %199 = arith.mulf %196, %198 : vector<8x128xf32>
    %200 = arith.addf %172, %199 : vector<8x128xf32>
    %c99 = arith.constant 99 : index
    %201 = memref.load %arg1[%c99] : memref<128xf32, #tpu.memory_space<smem>>
    %202 = vector.broadcast %201 : f32 to vector<8x128xf32>
    %203 = arith.mulf %196, %202 : vector<8x128xf32>
    %204 = arith.addf %176, %203 : vector<8x128xf32>
    %c14 = arith.constant 14 : index
    %205 = memref.load %arg1[%c14] : memref<128xf32, #tpu.memory_space<smem>>
    %206 = vector.broadcast %205 : f32 to vector<8x128xf32>
    %207 = arith.mulf %8, %206 : vector<8x128xf32>
    %c78 = arith.constant 78 : index
    %208 = memref.load %arg1[%c78] : memref<128xf32, #tpu.memory_space<smem>>
    %209 = vector.broadcast %208 : f32 to vector<8x128xf32>
    %210 = arith.addf %207, %209 : vector<8x128xf32>
    %c30 = arith.constant 30 : index
    %211 = memref.load %arg1[%c30] : memref<128xf32, #tpu.memory_space<smem>>
    %212 = vector.broadcast %211 : f32 to vector<8x128xf32>
    %213 = arith.mulf %16, %212 : vector<8x128xf32>
    %214 = arith.addf %210, %213 : vector<8x128xf32>
    %c46 = arith.constant 46 : index
    %215 = memref.load %arg1[%c46] : memref<128xf32, #tpu.memory_space<smem>>
    %216 = vector.broadcast %215 : f32 to vector<8x128xf32>
    %217 = arith.mulf %24, %216 : vector<8x128xf32>
    %218 = arith.addf %214, %217 : vector<8x128xf32>
    %c62 = arith.constant 62 : index
    %219 = memref.load %arg1[%c62] : memref<128xf32, #tpu.memory_space<smem>>
    %220 = vector.broadcast %219 : f32 to vector<8x128xf32>
    %221 = arith.mulf %32, %220 : vector<8x128xf32>
    %222 = arith.addf %218, %221 : vector<8x128xf32>
    %cst_11 = arith.constant 0.000000e+00 : f32
    %223 = vector.broadcast %cst_11 : f32 to vector<8x128xf32>
    %224 = arith.maximumf %222, %223 : vector<8x128xf32>
    %c100 = arith.constant 100 : index
    %225 = memref.load %arg1[%c100] : memref<128xf32, #tpu.memory_space<smem>>
    %226 = vector.broadcast %225 : f32 to vector<8x128xf32>
    %227 = arith.mulf %224, %226 : vector<8x128xf32>
    %228 = arith.addf %200, %227 : vector<8x128xf32>
    %c101 = arith.constant 101 : index
    %229 = memref.load %arg1[%c101] : memref<128xf32, #tpu.memory_space<smem>>
    %230 = vector.broadcast %229 : f32 to vector<8x128xf32>
    %231 = arith.mulf %224, %230 : vector<8x128xf32>
    %232 = arith.addf %204, %231 : vector<8x128xf32>
    %c15 = arith.constant 15 : index
    %233 = memref.load %arg1[%c15] : memref<128xf32, #tpu.memory_space<smem>>
    %234 = vector.broadcast %233 : f32 to vector<8x128xf32>
    %235 = arith.mulf %8, %234 : vector<8x128xf32>
    %c79 = arith.constant 79 : index
    %236 = memref.load %arg1[%c79] : memref<128xf32, #tpu.memory_space<smem>>
    %237 = vector.broadcast %236 : f32 to vector<8x128xf32>
    %238 = arith.addf %235, %237 : vector<8x128xf32>
    %c31 = arith.constant 31 : index
    %239 = memref.load %arg1[%c31] : memref<128xf32, #tpu.memory_space<smem>>
    %240 = vector.broadcast %239 : f32 to vector<8x128xf32>
    %241 = arith.mulf %16, %240 : vector<8x128xf32>
    %242 = arith.addf %238, %241 : vector<8x128xf32>
    %c47 = arith.constant 47 : index
    %243 = memref.load %arg1[%c47] : memref<128xf32, #tpu.memory_space<smem>>
    %244 = vector.broadcast %243 : f32 to vector<8x128xf32>
    %245 = arith.mulf %24, %244 : vector<8x128xf32>
    %246 = arith.addf %242, %245 : vector<8x128xf32>
    %c63 = arith.constant 63 : index
    %247 = memref.load %arg1[%c63] : memref<128xf32, #tpu.memory_space<smem>>
    %248 = vector.broadcast %247 : f32 to vector<8x128xf32>
    %249 = arith.mulf %32, %248 : vector<8x128xf32>
    %250 = arith.addf %246, %249 : vector<8x128xf32>
    %cst_12 = arith.constant 0.000000e+00 : f32
    %251 = vector.broadcast %cst_12 : f32 to vector<8x128xf32>
    %252 = arith.maximumf %250, %251 : vector<8x128xf32>
    %c102 = arith.constant 102 : index
    %253 = memref.load %arg1[%c102] : memref<128xf32, #tpu.memory_space<smem>>
    %254 = vector.broadcast %253 : f32 to vector<8x128xf32>
    %255 = arith.mulf %252, %254 : vector<8x128xf32>
    %256 = arith.addf %228, %255 : vector<8x128xf32>
    %c103 = arith.constant 103 : index
    %257 = memref.load %arg1[%c103] : memref<128xf32, #tpu.memory_space<smem>>
    %258 = vector.broadcast %257 : f32 to vector<8x128xf32>
    %259 = arith.mulf %252, %258 : vector<8x128xf32>
    %260 = arith.addf %232, %259 : vector<8x128xf32>
    %c16 = arith.constant 16 : index
    %261 = memref.load %arg1[%c16] : memref<128xf32, #tpu.memory_space<smem>>
    %262 = vector.broadcast %261 : f32 to vector<8x128xf32>
    %263 = arith.mulf %8, %262 : vector<8x128xf32>
    %c80 = arith.constant 80 : index
    %264 = memref.load %arg1[%c80] : memref<128xf32, #tpu.memory_space<smem>>
    %265 = vector.broadcast %264 : f32 to vector<8x128xf32>
    %266 = arith.addf %263, %265 : vector<8x128xf32>
    %c32 = arith.constant 32 : index
    %267 = memref.load %arg1[%c32] : memref<128xf32, #tpu.memory_space<smem>>
    %268 = vector.broadcast %267 : f32 to vector<8x128xf32>
    %269 = arith.mulf %16, %268 : vector<8x128xf32>
    %270 = arith.addf %266, %269 : vector<8x128xf32>
    %c48 = arith.constant 48 : index
    %271 = memref.load %arg1[%c48] : memref<128xf32, #tpu.memory_space<smem>>
    %272 = vector.broadcast %271 : f32 to vector<8x128xf32>
    %273 = arith.mulf %24, %272 : vector<8x128xf32>
    %274 = arith.addf %270, %273 : vector<8x128xf32>
    %c64 = arith.constant 64 : index
    %275 = memref.load %arg1[%c64] : memref<128xf32, #tpu.memory_space<smem>>
    %276 = vector.broadcast %275 : f32 to vector<8x128xf32>
    %277 = arith.mulf %32, %276 : vector<8x128xf32>
    %278 = arith.addf %274, %277 : vector<8x128xf32>
    %cst_13 = arith.constant 0.000000e+00 : f32
    %279 = vector.broadcast %cst_13 : f32 to vector<8x128xf32>
    %280 = arith.maximumf %278, %279 : vector<8x128xf32>
    %c104 = arith.constant 104 : index
    %281 = memref.load %arg1[%c104] : memref<128xf32, #tpu.memory_space<smem>>
    %282 = vector.broadcast %281 : f32 to vector<8x128xf32>
    %283 = arith.mulf %280, %282 : vector<8x128xf32>
    %284 = arith.addf %256, %283 : vector<8x128xf32>
    %c105 = arith.constant 105 : index
    %285 = memref.load %arg1[%c105] : memref<128xf32, #tpu.memory_space<smem>>
    %286 = vector.broadcast %285 : f32 to vector<8x128xf32>
    %287 = arith.mulf %280, %286 : vector<8x128xf32>
    %288 = arith.addf %260, %287 : vector<8x128xf32>
    %c17 = arith.constant 17 : index
    %289 = memref.load %arg1[%c17] : memref<128xf32, #tpu.memory_space<smem>>
    %290 = vector.broadcast %289 : f32 to vector<8x128xf32>
    %291 = arith.mulf %8, %290 : vector<8x128xf32>
    %c81 = arith.constant 81 : index
    %292 = memref.load %arg1[%c81] : memref<128xf32, #tpu.memory_space<smem>>
    %293 = vector.broadcast %292 : f32 to vector<8x128xf32>
    %294 = arith.addf %291, %293 : vector<8x128xf32>
    %c33 = arith.constant 33 : index
    %295 = memref.load %arg1[%c33] : memref<128xf32, #tpu.memory_space<smem>>
    %296 = vector.broadcast %295 : f32 to vector<8x128xf32>
    %297 = arith.mulf %16, %296 : vector<8x128xf32>
    %298 = arith.addf %294, %297 : vector<8x128xf32>
    %c49 = arith.constant 49 : index
    %299 = memref.load %arg1[%c49] : memref<128xf32, #tpu.memory_space<smem>>
    %300 = vector.broadcast %299 : f32 to vector<8x128xf32>
    %301 = arith.mulf %24, %300 : vector<8x128xf32>
    %302 = arith.addf %298, %301 : vector<8x128xf32>
    %c65 = arith.constant 65 : index
    %303 = memref.load %arg1[%c65] : memref<128xf32, #tpu.memory_space<smem>>
    %304 = vector.broadcast %303 : f32 to vector<8x128xf32>
    %305 = arith.mulf %32, %304 : vector<8x128xf32>
    %306 = arith.addf %302, %305 : vector<8x128xf32>
    %cst_14 = arith.constant 0.000000e+00 : f32
    %307 = vector.broadcast %cst_14 : f32 to vector<8x128xf32>
    %308 = arith.maximumf %306, %307 : vector<8x128xf32>
    %c106 = arith.constant 106 : index
    %309 = memref.load %arg1[%c106] : memref<128xf32, #tpu.memory_space<smem>>
    %310 = vector.broadcast %309 : f32 to vector<8x128xf32>
    %311 = arith.mulf %308, %310 : vector<8x128xf32>
    %312 = arith.addf %284, %311 : vector<8x128xf32>
    %c107 = arith.constant 107 : index
    %313 = memref.load %arg1[%c107] : memref<128xf32, #tpu.memory_space<smem>>
    %314 = vector.broadcast %313 : f32 to vector<8x128xf32>
    %315 = arith.mulf %308, %314 : vector<8x128xf32>
    %316 = arith.addf %288, %315 : vector<8x128xf32>
    %c18 = arith.constant 18 : index
    %317 = memref.load %arg1[%c18] : memref<128xf32, #tpu.memory_space<smem>>
    %318 = vector.broadcast %317 : f32 to vector<8x128xf32>
    %319 = arith.mulf %8, %318 : vector<8x128xf32>
    %c82 = arith.constant 82 : index
    %320 = memref.load %arg1[%c82] : memref<128xf32, #tpu.memory_space<smem>>
    %321 = vector.broadcast %320 : f32 to vector<8x128xf32>
    %322 = arith.addf %319, %321 : vector<8x128xf32>
    %c34 = arith.constant 34 : index
    %323 = memref.load %arg1[%c34] : memref<128xf32, #tpu.memory_space<smem>>
    %324 = vector.broadcast %323 : f32 to vector<8x128xf32>
    %325 = arith.mulf %16, %324 : vector<8x128xf32>
    %326 = arith.addf %322, %325 : vector<8x128xf32>
    %c50 = arith.constant 50 : index
    %327 = memref.load %arg1[%c50] : memref<128xf32, #tpu.memory_space<smem>>
    %328 = vector.broadcast %327 : f32 to vector<8x128xf32>
    %329 = arith.mulf %24, %328 : vector<8x128xf32>
    %330 = arith.addf %326, %329 : vector<8x128xf32>
    %c66 = arith.constant 66 : index
    %331 = memref.load %arg1[%c66] : memref<128xf32, #tpu.memory_space<smem>>
    %332 = vector.broadcast %331 : f32 to vector<8x128xf32>
    %333 = arith.mulf %32, %332 : vector<8x128xf32>
    %334 = arith.addf %330, %333 : vector<8x128xf32>
    %cst_15 = arith.constant 0.000000e+00 : f32
    %335 = vector.broadcast %cst_15 : f32 to vector<8x128xf32>
    %336 = arith.maximumf %334, %335 : vector<8x128xf32>
    %c108 = arith.constant 108 : index
    %337 = memref.load %arg1[%c108] : memref<128xf32, #tpu.memory_space<smem>>
    %338 = vector.broadcast %337 : f32 to vector<8x128xf32>
    %339 = arith.mulf %336, %338 : vector<8x128xf32>
    %340 = arith.addf %312, %339 : vector<8x128xf32>
    %c109 = arith.constant 109 : index
    %341 = memref.load %arg1[%c109] : memref<128xf32, #tpu.memory_space<smem>>
    %342 = vector.broadcast %341 : f32 to vector<8x128xf32>
    %343 = arith.mulf %336, %342 : vector<8x128xf32>
    %344 = arith.addf %316, %343 : vector<8x128xf32>
    %c19 = arith.constant 19 : index
    %345 = memref.load %arg1[%c19] : memref<128xf32, #tpu.memory_space<smem>>
    %346 = vector.broadcast %345 : f32 to vector<8x128xf32>
    %347 = arith.mulf %8, %346 : vector<8x128xf32>
    %c83 = arith.constant 83 : index
    %348 = memref.load %arg1[%c83] : memref<128xf32, #tpu.memory_space<smem>>
    %349 = vector.broadcast %348 : f32 to vector<8x128xf32>
    %350 = arith.addf %347, %349 : vector<8x128xf32>
    %c35 = arith.constant 35 : index
    %351 = memref.load %arg1[%c35] : memref<128xf32, #tpu.memory_space<smem>>
    %352 = vector.broadcast %351 : f32 to vector<8x128xf32>
    %353 = arith.mulf %16, %352 : vector<8x128xf32>
    %354 = arith.addf %350, %353 : vector<8x128xf32>
    %c51 = arith.constant 51 : index
    %355 = memref.load %arg1[%c51] : memref<128xf32, #tpu.memory_space<smem>>
    %356 = vector.broadcast %355 : f32 to vector<8x128xf32>
    %357 = arith.mulf %24, %356 : vector<8x128xf32>
    %358 = arith.addf %354, %357 : vector<8x128xf32>
    %c67 = arith.constant 67 : index
    %359 = memref.load %arg1[%c67] : memref<128xf32, #tpu.memory_space<smem>>
    %360 = vector.broadcast %359 : f32 to vector<8x128xf32>
    %361 = arith.mulf %32, %360 : vector<8x128xf32>
    %362 = arith.addf %358, %361 : vector<8x128xf32>
    %cst_16 = arith.constant 0.000000e+00 : f32
    %363 = vector.broadcast %cst_16 : f32 to vector<8x128xf32>
    %364 = arith.maximumf %362, %363 : vector<8x128xf32>
    %c110 = arith.constant 110 : index
    %365 = memref.load %arg1[%c110] : memref<128xf32, #tpu.memory_space<smem>>
    %366 = vector.broadcast %365 : f32 to vector<8x128xf32>
    %367 = arith.mulf %364, %366 : vector<8x128xf32>
    %368 = arith.addf %340, %367 : vector<8x128xf32>
    %c111 = arith.constant 111 : index
    %369 = memref.load %arg1[%c111] : memref<128xf32, #tpu.memory_space<smem>>
    %370 = vector.broadcast %369 : f32 to vector<8x128xf32>
    %371 = arith.mulf %364, %370 : vector<8x128xf32>
    %372 = arith.addf %344, %371 : vector<8x128xf32>
    %c20 = arith.constant 20 : index
    %373 = memref.load %arg1[%c20] : memref<128xf32, #tpu.memory_space<smem>>
    %374 = vector.broadcast %373 : f32 to vector<8x128xf32>
    %375 = arith.mulf %8, %374 : vector<8x128xf32>
    %c84 = arith.constant 84 : index
    %376 = memref.load %arg1[%c84] : memref<128xf32, #tpu.memory_space<smem>>
    %377 = vector.broadcast %376 : f32 to vector<8x128xf32>
    %378 = arith.addf %375, %377 : vector<8x128xf32>
    %c36 = arith.constant 36 : index
    %379 = memref.load %arg1[%c36] : memref<128xf32, #tpu.memory_space<smem>>
    %380 = vector.broadcast %379 : f32 to vector<8x128xf32>
    %381 = arith.mulf %16, %380 : vector<8x128xf32>
    %382 = arith.addf %378, %381 : vector<8x128xf32>
    %c52 = arith.constant 52 : index
    %383 = memref.load %arg1[%c52] : memref<128xf32, #tpu.memory_space<smem>>
    %384 = vector.broadcast %383 : f32 to vector<8x128xf32>
    %385 = arith.mulf %24, %384 : vector<8x128xf32>
    %386 = arith.addf %382, %385 : vector<8x128xf32>
    %c68 = arith.constant 68 : index
    %387 = memref.load %arg1[%c68] : memref<128xf32, #tpu.memory_space<smem>>
    %388 = vector.broadcast %387 : f32 to vector<8x128xf32>
    %389 = arith.mulf %32, %388 : vector<8x128xf32>
    %390 = arith.addf %386, %389 : vector<8x128xf32>
    %cst_17 = arith.constant 0.000000e+00 : f32
    %391 = vector.broadcast %cst_17 : f32 to vector<8x128xf32>
    %392 = arith.maximumf %390, %391 : vector<8x128xf32>
    %c112 = arith.constant 112 : index
    %393 = memref.load %arg1[%c112] : memref<128xf32, #tpu.memory_space<smem>>
    %394 = vector.broadcast %393 : f32 to vector<8x128xf32>
    %395 = arith.mulf %392, %394 : vector<8x128xf32>
    %396 = arith.addf %368, %395 : vector<8x128xf32>
    %c113 = arith.constant 113 : index
    %397 = memref.load %arg1[%c113] : memref<128xf32, #tpu.memory_space<smem>>
    %398 = vector.broadcast %397 : f32 to vector<8x128xf32>
    %399 = arith.mulf %392, %398 : vector<8x128xf32>
    %400 = arith.addf %372, %399 : vector<8x128xf32>
    %c21 = arith.constant 21 : index
    %401 = memref.load %arg1[%c21] : memref<128xf32, #tpu.memory_space<smem>>
    %402 = vector.broadcast %401 : f32 to vector<8x128xf32>
    %403 = arith.mulf %8, %402 : vector<8x128xf32>
    %c85 = arith.constant 85 : index
    %404 = memref.load %arg1[%c85] : memref<128xf32, #tpu.memory_space<smem>>
    %405 = vector.broadcast %404 : f32 to vector<8x128xf32>
    %406 = arith.addf %403, %405 : vector<8x128xf32>
    %c37 = arith.constant 37 : index
    %407 = memref.load %arg1[%c37] : memref<128xf32, #tpu.memory_space<smem>>
    %408 = vector.broadcast %407 : f32 to vector<8x128xf32>
    %409 = arith.mulf %16, %408 : vector<8x128xf32>
    %410 = arith.addf %406, %409 : vector<8x128xf32>
    %c53 = arith.constant 53 : index
    %411 = memref.load %arg1[%c53] : memref<128xf32, #tpu.memory_space<smem>>
    %412 = vector.broadcast %411 : f32 to vector<8x128xf32>
    %413 = arith.mulf %24, %412 : vector<8x128xf32>
    %414 = arith.addf %410, %413 : vector<8x128xf32>
    %c69 = arith.constant 69 : index
    %415 = memref.load %arg1[%c69] : memref<128xf32, #tpu.memory_space<smem>>
    %416 = vector.broadcast %415 : f32 to vector<8x128xf32>
    %417 = arith.mulf %32, %416 : vector<8x128xf32>
    %418 = arith.addf %414, %417 : vector<8x128xf32>
    %cst_18 = arith.constant 0.000000e+00 : f32
    %419 = vector.broadcast %cst_18 : f32 to vector<8x128xf32>
    %420 = arith.maximumf %418, %419 : vector<8x128xf32>
    %c114 = arith.constant 114 : index
    %421 = memref.load %arg1[%c114] : memref<128xf32, #tpu.memory_space<smem>>
    %422 = vector.broadcast %421 : f32 to vector<8x128xf32>
    %423 = arith.mulf %420, %422 : vector<8x128xf32>
    %424 = arith.addf %396, %423 : vector<8x128xf32>
    %c115 = arith.constant 115 : index
    %425 = memref.load %arg1[%c115] : memref<128xf32, #tpu.memory_space<smem>>
    %426 = vector.broadcast %425 : f32 to vector<8x128xf32>
    %427 = arith.mulf %420, %426 : vector<8x128xf32>
    %428 = arith.addf %400, %427 : vector<8x128xf32>
    %c22 = arith.constant 22 : index
    %429 = memref.load %arg1[%c22] : memref<128xf32, #tpu.memory_space<smem>>
    %430 = vector.broadcast %429 : f32 to vector<8x128xf32>
    %431 = arith.mulf %8, %430 : vector<8x128xf32>
    %c86 = arith.constant 86 : index
    %432 = memref.load %arg1[%c86] : memref<128xf32, #tpu.memory_space<smem>>
    %433 = vector.broadcast %432 : f32 to vector<8x128xf32>
    %434 = arith.addf %431, %433 : vector<8x128xf32>
    %c38 = arith.constant 38 : index
    %435 = memref.load %arg1[%c38] : memref<128xf32, #tpu.memory_space<smem>>
    %436 = vector.broadcast %435 : f32 to vector<8x128xf32>
    %437 = arith.mulf %16, %436 : vector<8x128xf32>
    %438 = arith.addf %434, %437 : vector<8x128xf32>
    %c54 = arith.constant 54 : index
    %439 = memref.load %arg1[%c54] : memref<128xf32, #tpu.memory_space<smem>>
    %440 = vector.broadcast %439 : f32 to vector<8x128xf32>
    %441 = arith.mulf %24, %440 : vector<8x128xf32>
    %442 = arith.addf %438, %441 : vector<8x128xf32>
    %c70 = arith.constant 70 : index
    %443 = memref.load %arg1[%c70] : memref<128xf32, #tpu.memory_space<smem>>
    %444 = vector.broadcast %443 : f32 to vector<8x128xf32>
    %445 = arith.mulf %32, %444 : vector<8x128xf32>
    %446 = arith.addf %442, %445 : vector<8x128xf32>
    %cst_19 = arith.constant 0.000000e+00 : f32
    %447 = vector.broadcast %cst_19 : f32 to vector<8x128xf32>
    %448 = arith.maximumf %446, %447 : vector<8x128xf32>
    %c116 = arith.constant 116 : index
    %449 = memref.load %arg1[%c116] : memref<128xf32, #tpu.memory_space<smem>>
    %450 = vector.broadcast %449 : f32 to vector<8x128xf32>
    %451 = arith.mulf %448, %450 : vector<8x128xf32>
    %452 = arith.addf %424, %451 : vector<8x128xf32>
    %c117 = arith.constant 117 : index
    %453 = memref.load %arg1[%c117] : memref<128xf32, #tpu.memory_space<smem>>
    %454 = vector.broadcast %453 : f32 to vector<8x128xf32>
    %455 = arith.mulf %448, %454 : vector<8x128xf32>
    %456 = arith.addf %428, %455 : vector<8x128xf32>
    %c23 = arith.constant 23 : index
    %457 = memref.load %arg1[%c23] : memref<128xf32, #tpu.memory_space<smem>>
    %458 = vector.broadcast %457 : f32 to vector<8x128xf32>
    %459 = arith.mulf %8, %458 : vector<8x128xf32>
    %c87 = arith.constant 87 : index
    %460 = memref.load %arg1[%c87] : memref<128xf32, #tpu.memory_space<smem>>
    %461 = vector.broadcast %460 : f32 to vector<8x128xf32>
    %462 = arith.addf %459, %461 : vector<8x128xf32>
    %c39 = arith.constant 39 : index
    %463 = memref.load %arg1[%c39] : memref<128xf32, #tpu.memory_space<smem>>
    %464 = vector.broadcast %463 : f32 to vector<8x128xf32>
    %465 = arith.mulf %16, %464 : vector<8x128xf32>
    %466 = arith.addf %462, %465 : vector<8x128xf32>
    %c55 = arith.constant 55 : index
    %467 = memref.load %arg1[%c55] : memref<128xf32, #tpu.memory_space<smem>>
    %468 = vector.broadcast %467 : f32 to vector<8x128xf32>
    %469 = arith.mulf %24, %468 : vector<8x128xf32>
    %470 = arith.addf %466, %469 : vector<8x128xf32>
    %c71 = arith.constant 71 : index
    %471 = memref.load %arg1[%c71] : memref<128xf32, #tpu.memory_space<smem>>
    %472 = vector.broadcast %471 : f32 to vector<8x128xf32>
    %473 = arith.mulf %32, %472 : vector<8x128xf32>
    %474 = arith.addf %470, %473 : vector<8x128xf32>
    %cst_20 = arith.constant 0.000000e+00 : f32
    %475 = vector.broadcast %cst_20 : f32 to vector<8x128xf32>
    %476 = arith.maximumf %474, %475 : vector<8x128xf32>
    %c118 = arith.constant 118 : index
    %477 = memref.load %arg1[%c118] : memref<128xf32, #tpu.memory_space<smem>>
    %478 = vector.broadcast %477 : f32 to vector<8x128xf32>
    %479 = arith.mulf %476, %478 : vector<8x128xf32>
    %480 = arith.addf %452, %479 : vector<8x128xf32>
    %c119 = arith.constant 119 : index
    %481 = memref.load %arg1[%c119] : memref<128xf32, #tpu.memory_space<smem>>
    %482 = vector.broadcast %481 : f32 to vector<8x128xf32>
    %483 = arith.mulf %476, %482 : vector<8x128xf32>
    %484 = arith.addf %456, %483 : vector<8x128xf32>
    %c0_21 = arith.constant 0 : index
    %c0_22 = arith.constant 0 : index
    %c0_23 = arith.constant 0 : index
    %485 = vector.load %arg3[%c0_21, %c0_22, %c0_23] : memref<2x8x128xf32, #tpu.memory_space<vmem>>, vector<1x8x128xf32>
    %486 = vector.shape_cast %485 : vector<1x8x128xf32> to vector<8x128xf32>
    %487 = vector.shape_cast %480 : vector<8x128xf32> to vector<1x8x128xf32>
    tpu.vector_store %arg3[%c0_21, %c0_22, %c0_23], %487 {strides = array<i32>} : memref<2x8x128xf32, #tpu.memory_space<vmem>>, vector<1x8x128xf32>,
    %c1_24 = arith.constant 1 : index
    %c0_25 = arith.constant 0 : index
    %c0_26 = arith.constant 0 : index
    %488 = vector.load %arg3[%c1_24, %c0_25, %c0_26] : memref<2x8x128xf32, #tpu.memory_space<vmem>>, vector<1x8x128xf32>
    %489 = vector.shape_cast %488 : vector<1x8x128xf32> to vector<8x128xf32>
    %490 = vector.shape_cast %484 : vector<8x128xf32> to vector<1x8x128xf32>
    tpu.vector_store %arg3[%c1_24, %c0_25, %c0_26], %490 {strides = array<i32>} : memref<2x8x128xf32, #tpu.memory_space<vmem>>, vector<1x8x128xf32>,
    return
  }
  func.func @transform_0(%arg0: i32) -> i32 {
    %c0_i32 = arith.constant 0 : i32
    %c0_i32_0 = arith.constant 0 : i32
    return %c0_i32 : i32
  }
  func.func @transform_1(%arg0: i32) -> (i32, i32) {
    %c0_i32 = arith.constant 0 : i32
    %c0_i32_0 = arith.constant 0 : i32
    return %arg0, %c0_i32 : i32, i32
  }
  func.func @transform_2(%arg0: i32) -> (i32, i32, i32) {
    %c0_i32 = arith.constant 0 : i32
    %c0_i32_0 = arith.constant 0 : i32
    %c0_i32_1 = arith.constant 0 : i32
    return %c0_i32, %arg0, %c0_i32_0 : i32, i32, i32
  }
}

</mosaic_0001>

<bundles_post_ra>
// kernel: tpu_custom_call.1
= control target key start
LH: loop header
LB: loop body
LE: loop exit
PB: predicated region body
PF: predicated region fallthrough
CT: control target
= control target key end

     0   :  { %7 = vsyncpa [#allocation5], 0  ;;  %s1179_s0 = inlined_call_operand.hbm [shape: f32[128], index: 0, kind: input, shape index: {}]   ;;  %s1180_s1 = inlined_call_operand.hbm [shape: f32[8,128], index: 1, kind: input, shape index: {}]   ;;  %s1181_s2 = inlined_call_operand.hbm [shape: f32[2,8,128], index: 2, kind: output, shape index: {}]  }
   0x1   :  { %8 = vsyncpa [#allocation3], 0 }
   0x2   :  { %9 = vsyncpa [#allocation4], 0  ;;  %s647_s11 = scalar_lea.hbm %s1179_s0, 16 }
   0x3   :  { %p648_p0 = scmp.ne.s32.totalorder %s1179_s0, %s647_s11  ;;  %p651_p1 = scmp.lt.u32.totalorder %s647_s11, %s1179_s0 }
   0x5   :  { %p653_p2 = pnand %p651_p1, %p648_p0 }
   0x7   :  { %656 = shalt.err (!%p653_p2)
}
   0x8   :  { %s707_s16 = smov [#allocation2]   ;;  %s708_s19 = smov [#allocation6]  }
   0x9   :  { %17 = dma.hbm_to_smem %s1179_s0, 16, %s707_s16, [#allocation5]  }
   0xa   :  { %s24_s20 = sshll.u32 %s708_s19, 4  ;;  %s657_s23 = scalar_lea.hbm %s1180_s1, 128  ;;  %s25_s20 = int_to_ptr.vmem [resolvable:$true] %s24_s20 }
   0xb   :  { %p658_p3 = scmp.ne.s32.totalorder %s1180_s1, %s657_s23  ;;  %p661_p4 = scmp.lt.u32.totalorder %s657_s23, %s1180_s1 }
   0xd   :  { %p663_p5 = pnand %p661_p4, %p658_p3 }
   0xf   :  { %666 = shalt.err (!%p663_p5)
}
  0x10   :  { %s667_s28 = scalar_lea.vmem %s25_s20, 128  ;;  %p672_p7 = scmp.lt.s32.totalorder %s25_s20, %s25_s20 }
  0x11   :  { %p668_p6 = scmp.ne.s32.totalorder %s25_s20, %s667_s28  ;;  %p673_p8 = scmp.lt.s32.totalorder %s667_s28, %s667_s28 }
  0x13   :  { %p674_p9 = por %p673_p8, %p672_p7 }
  0x15   :  { %p675_p10 = pnand %p674_p9, %p668_p6 }
  0x17   :  { %678 = shalt.err (!%p675_p10)
}
  0x18   :  { %27 = dma.hbm_to_vmem [thread:$0]  %s1180_s1, 128, %s25_s20, [#allocation3]  }
  0x19   :  { %701 = dma.done.wait [#allocation5], 16  }
  0x1a   :  { %702 = vsyncadd [#allocation5], 4294967280 }
  0x1b   :  { %703 = dma.done.wait [#allocation3], 128  }
  0x1c   :  { %704 = vsyncadd [#allocation3], 4294967168 }
  0x1d   :  { %34 = sfence }
  0x1e   :  { %s36_s30 = sld [smem:[#allocation2]]  ;;  %s521_s3 = sld [smem:[#allocation2 + $0x4]]  ;;  %v35_v0 = vld [vmem:[#allocation6] sm:$0xff] }
  0x1f   :  { %s522_s4 = sld [smem:[#allocation2 + $0x1]]  ;;  %s523_s5 = sld [smem:[#allocation2 + $0x5]] }
  0x20   :  { %s524_s6 = sld [smem:[#allocation2 + $0x2]]  ;;  %s751_s7 = sld [smem:[#allocation2 + $0x6]] }
  0x21   :  { %s526_s8 = sld [smem:[#allocation2 + $0x3]]  ;;  %s753_s9 = sld [smem:[#allocation2 + $0x7]] }
  0x22   :  { %s755_s10 = sld [smem:[#allocation2 + $0x8]]  ;;  %s769_s16 = sld [smem:[#allocation2 + $0x59]] }
  0x23   :  { %s757_s1 = sld [smem:[#allocation2 + $0x48]]  ;;  %s772_s17 = sld [smem:[#allocation2 + $0x79]] }
  0x24   :  { %s759_s11 = sld [smem:[#allocation2 + $0x18]]  ;;  %v37_v1 = vstv %s36_s30  ;;  %v40_v2 = vstv %s521_s3  ;;  %s774_s18 = sld [smem:[#allocation2 + $0x9]] }
  0x25   :  { %s761_s12 = sld [smem:[#allocation2 + $0x28]]  ;;  %v38_v3 = vmul.f32 %v37_v1, %v35_v0  ;;  %v44_v4 = vstv %s522_s4  ;;  %v47_v5 = vstv %s523_s5  ;;  %s777_s19 = sld [smem:[#allocation2 + $0x49]] }
  0x26   :  { %s763_s13 = sld [smem:[#allocation2 + $0x38]]  ;;  %v45_v6 = vmul.f32 %v44_v4, %v35_v0  ;;  %v51_v7 = vstv %s524_s6  ;;  %v54_v8 = vstv %s751_s7  ;;  %s779_s20 = sld [smem:[#allocation2 + $0x19]] }
  0x27   :  { %s765_s14 = sld [smem:[#allocation2 + $0x58]]  ;;  %v41_v9 = vadd.f32 %v40_v2, %v38_v3  ;;  %v52_v10 = vmul.f32 %v51_v7, %v35_v0  ;;  %v58_v11 = vstv %s526_s8  ;;  %v61_v12 = vstv %s753_s9  ;;  %s782_s21 = sld [smem:[#allocation2 + $0x29]] }
  0x28   :  { %s767_s15 = sld [smem:[#allocation2 + $0x78]]  ;;  %v48_v13 = vadd.f32 %v47_v5, %v45_v6  ;;  %v59_v14 = vmul.f32 %v58_v11, %v35_v0  ;;  %v65_v15 = vstv %s755_s10  ;;  %s784_s22 = sld [smem:[#allocation2 + $0x39]]  ;;  %v90_v43 = vstv %s769_s16 }
  0x29   :  { %v786_v16 = vmax.f32 %v41_v9, 0.0  ;;  %v55_v17 = vadd.f32 %v54_v8, %v52_v10  ;;  %s789_s23 = sld [smem:[#allocation2 + $0x5a]]  ;;  %v68_v21 = vstv %s757_s1  ;;  %s813_s28 = sld [smem:[#allocation2 + $0x5b]]  ;;  %v93_v44 = vstv %s772_s17 }
  0x2a   :  { %v71_v18 = vstv %s759_s11  ;;  %v791_v19 = vmax.f32 %v48_v13, 0.0  ;;  %v62_v20 = vadd.f32 %v61_v12, %v59_v14  ;;  %s795_s24 = sld [smem:[#allocation2 + $0xa]]  ;;  %v96_v30 = vstv %s774_s18  ;;  %s820_s29 = sld [smem:[#allocation2 + $0xb]] }
  0x2b   :  { %v75_v22 = vstv %s761_s12  ;;  %s797_s25 = sld [smem:[#allocation2 + $0x4a]]  ;;  %v799_v23 = vmax.f32 %v55_v17, 0.0  ;;  %v66_v24 = vmul.f32 %v65_v15, %v786_v16  ;;  %v97_v33 = vmul.f32 %v96_v30, %v786_v16  ;;  %s826_s30 = sld [smem:[#allocation2 + $0x4b]] }
  0x2c   :  { %v79_v25 = vstv %s763_s13  ;;  %s804_s26 = sld [smem:[#allocation2 + $0x1a]]  ;;  %v808_v27 = vmax.f32 %v62_v20, 0.0  ;;  %v72_v28 = vmul.f32 %v71_v18, %v791_v19  ;;  %v99_v34 = vstv %s777_s19  ;;  %s828_s3 = sld [smem:[#allocation2 + $0x1b]] }
  0x2d   :  { %v84_v26 = vstv %s765_s14  ;;  %s806_s27 = sld [smem:[#allocation2 + $0x2a]]  ;;  %v69_v31 = vadd.f32 %v68_v21, %v66_v24  ;;  %v76_v32 = vmul.f32 %v75_v22, %v799_v23  ;;  %v102_v36 = vstv %s779_s20  ;;  %s832_s4 = sld [smem:[#allocation2 + $0x2b]] }
  0x2e   :  { %v87_v29 = vstv %s767_s15  ;;  %s815_s0 = sld [smem:[#allocation2 + $0x3a]]  ;;  %v80_v35 = vmul.f32 %v79_v25, %v808_v27  ;;  %v106_v37 = vstv %s782_s21  ;;  %v110_v38 = vstv %s784_s22  ;;  %s834_s5 = sld [smem:[#allocation2 + $0x3b]] }
  0x2f   :  { %v73_v39 = vadd.f32 %v72_v28, %v69_v31  ;;  %v100_v40 = vadd.f32 %v99_v34, %v97_v33  ;;  %v103_v41 = vmul.f32 %v102_v36, %v791_v19  ;;  %v107_v42 = vmul.f32 %v106_v37, %v799_v23  ;;  %s840_s6 = sld [smem:[#allocation2 + $0x5c]]  ;;  %s848_s7 = sld [smem:[#allocation2 + $0x5d]] }
  0x30   :  { %v111_v45 = vmul.f32 %v110_v38, %v808_v27  ;;  %v123_v46 = vstv %s795_s24  ;;  %v115_v51 = vstv %s789_s23  ;;  %s851_s8 = sld [smem:[#allocation2 + $0xc]]  ;;  %v119_v59 = vstv %s813_s28  ;;  %s859_s10 = sld [smem:[#allocation2 + $0x5e]] }
  0x31   :  { %v77_v47 = vadd.f32 %v76_v32, %v73_v39  ;;  %v104_v48 = vadd.f32 %v103_v41, %v100_v40  ;;  %v124_v49 = vmul.f32 %v123_v46, %v786_v16  ;;  %v126_v50 = vstv %s797_s25  ;;  %s853_s9 = sld [smem:[#allocation2 + $0x4c]]  ;;  %s872_s13 = sld [smem:[#allocation2 + $0x5f]] }
  0x32   :  { %v129_v52 = vstv %s804_s26  ;;  %v150_v62 = vstv %s820_s29  ;;  %s861_s1 = sld [smem:[#allocation2 + $0x1c]]  ;;  %v153_v3 = vstv %s826_s30  ;;  %v156_v4 = vstv %s828_s3  ;;  %s874_s14 = sld [smem:[#allocation2 + $0xd]] }
  0x33   :  { %v133_v53 = vstv %s806_s27  ;;  %v81_v55 = vadd.f32 %v80_v35, %v77_v47  ;;  %v108_v56 = vadd.f32 %v107_v42, %v104_v48  ;;  %v127_v57 = vadd.f32 %v126_v50, %v124_v49  ;;  %s864_s11 = sld [smem:[#allocation2 + $0x2c]]  ;;  %s879_s16 = sld [smem:[#allocation2 + $0x4d]] }
  0x34   :  { %v137_v54 = vstv %s815_s0  ;;  %v130_v58 = vmul.f32 %v129_v52, %v791_v19  ;;  %v134_v60 = vmul.f32 %v133_v53, %v799_v23  ;;  %v151_v2 = vmul.f32 %v150_v62, %v786_v16  ;;  %s866_s12 = sld [smem:[#allocation2 + $0x3c]]  ;;  %s883_s17 = sld [smem:[#allocation2 + $0x1d]] }
  0x35   :  { %v138_v61 = vmul.f32 %v137_v54, %v808_v27  ;;  %v82_v63 = vmax.f32 %v81_v55, 0.0  ;;  %v112_v0 = vadd.f32 %v111_v45, %v108_v56  ;;  %v160_v5 = vstv %s832_s4  ;;  %s885_s18 = sld [smem:[#allocation2 + $0x2d]]  ;;  %s891_s15 = sld [smem:[#allocation2 + $0x60]] }
  0x36   :  { %v131_v1 = vadd.f32 %v130_v58, %v127_v57  ;;  %v164_v6 = vstv %s834_s5  ;;  %v142_v11 = vstv %s840_s6  ;;  %v154_v12 = vadd.f32 %v153_v3, %v151_v2  ;;  %s893_s19 = sld [smem:[#allocation2 + $0x3d]]  ;;  %s897_s20 = sld [smem:[#allocation2 + $0x61]] }
  0x37   :  { %v85_v7 = vmul.f32 %v84_v26, %v82_v63  ;;  %v91_v8 = vmul.f32 %v90_v43, %v82_v63  ;;  %v113_v9 = vmax.f32 %v112_v0, 0.0  ;;  %v157_v13 = vmul.f32 %v156_v4, %v791_v19  ;;  %s903_s21 = sld [smem:[#allocation2 + $0xe]]  ;;  %s915_s25 = sld [smem:[#allocation2 + $0x62]] }
  0x38   :  { %v135_v10 = vadd.f32 %v134_v60, %v131_v1  ;;  %v161_v14 = vmul.f32 %v160_v5, %v799_v23  ;;  %v146_v22 = vstv %s848_s7  ;;  %v165_v25 = vmul.f32 %v164_v6, %v808_v27  ;;  %s905_s22 = sld [smem:[#allocation2 + $0x4e]]  ;;  %s923_s27 = sld [smem:[#allocation2 + $0x63]] }
  0x39   :  { %v88_v15 = vadd.f32 %v87_v29, %v85_v7  ;;  %v94_v17 = vadd.f32 %v93_v44, %v91_v8  ;;  %v116_v18 = vmul.f32 %v115_v51, %v113_v9  ;;  %v120_v20 = vmul.f32 %v119_v59, %v113_v9  ;;  %s907_s23 = sld [smem:[#allocation2 + $0x1e]]  ;;  %s925_s28 = sld [smem:[#allocation2 + $0xf]] }
  0x3a   :  { %v139_v21 = vadd.f32 %v138_v61, %v135_v10  ;;  %v158_v24 = vadd.f32 %v157_v13, %v154_v12  ;;  %v177_v30 = vstv %s851_s8  ;;  %v180_v29 = vstv %s853_s9  ;;  %s909_s24 = sld [smem:[#allocation2 + $0x2e]]  ;;  %s928_s0 = sld [smem:[#allocation2 + $0x4f]] }
  0x3b   :  { %v117_v26 = vadd.f32 %v116_v18, %v88_v15  ;;  %v121_v28 = vadd.f32 %v120_v20, %v94_v17  ;;  %v178_v33 = vmul.f32 %v177_v30, %v786_v16  ;;  %v183_v34 = vstv %s861_s1  ;;  %s917_s26 = sld [smem:[#allocation2 + $0x3e]]  ;;  %s933_s29 = sld [smem:[#allocation2 + $0x1f]] }
  0x3c   :  { %v140_v31 = vmax.f32 %v139_v21, 0.0  ;;  %v162_v32 = vadd.f32 %v161_v14, %v158_v24  ;;  %v169_v35 = vstv %s859_s10  ;;  %v184_v36 = vmul.f32 %v183_v34, %v791_v19  ;;  %s935_s30 = sld [smem:[#allocation2 + $0x2f]]  ;;  %s941_s3 = sld [smem:[#allocation2 + $0x64]] }
  0x3d   :  { %v187_v37 = vstv %s864_s11  ;;  %v191_v38 = vstv %s866_s12  ;;  %v181_v42 = vadd.f32 %v180_v29, %v178_v33  ;;  %v173_v43 = vstv %s872_s13  ;;  %s943_s4 = sld [smem:[#allocation2 + $0x3f]]  ;;  %s948_s5 = sld [smem:[#allocation2 + $0x65]] }
  0x3e   :  { %v143_v39 = vmul.f32 %v142_v11, %v140_v31  ;;  %v147_v40 = vmul.f32 %v146_v22, %v140_v31  ;;  %v166_v41 = vadd.f32 %v165_v25, %v162_v32  ;;  %v188_v44 = vmul.f32 %v187_v37, %v799_v23  ;;  %s953_s6 = sld [smem:[#allocation2 + $0x10]]  ;;  %s958_s8 = sld [smem:[#allocation2 + $0x66]] }
  0x3f   :  { %v192_v45 = vmul.f32 %v191_v38, %v808_v27  ;;  %v204_v46 = vstv %s874_s14  ;;  %v185_v50 = vadd.f32 %v184_v36, %v181_v42  ;;  %v207_v52 = vstv %s879_s16  ;;  %s955_s7 = sld [smem:[#allocation2 + $0x50]]  ;;  %s973_s11 = sld [smem:[#allocation2 + $0x67]] }
  0x40   :  { %v144_v47 = vadd.f32 %v143_v39, %v117_v26  ;;  %v148_v48 = vadd.f32 %v147_v40, %v121_v28  ;;  %v167_v49 = vmax.f32 %v166_v41, 0.0  ;;  %v205_v51 = vmul.f32 %v204_v46, %v786_v16  ;;  %s960_s9 = sld [smem:[#allocation2 + $0x20]]  ;;  %s975_s12 = sld [smem:[#allocation2 + $0x11]] }
  0x41   :  { %v210_v53 = vstv %s883_s17  ;;  %v214_v54 = vstv %s885_s18  ;;  %v189_v57 = vadd.f32 %v188_v44, %v185_v50  ;;  %v196_v59 = vstv %s891_s15  ;;  %s965_s10 = sld [smem:[#allocation2 + $0x30]]  ;;  %s979_s13 = sld [smem:[#allocation2 + $0x51]] }
  0x42   :  { %v170_v55 = vmul.f32 %v169_v35, %v167_v49  ;;  %v174_v56 = vmul.f32 %v173_v43, %v167_v49  ;;  %v211_v58 = vmul.f32 %v210_v53, %v791_v19  ;;  %v208_v60 = vadd.f32 %v207_v52, %v205_v51  ;;  %s967_s1 = sld [smem:[#allocation2 + $0x40]]  ;;  %s983_s14 = sld [smem:[#allocation2 + $0x21]] }
  0x43   :  { %v215_v61 = vmul.f32 %v214_v54, %v799_v23  ;;  %v218_v62 = vstv %s893_s19  ;;  %v193_v1 = vadd.f32 %v192_v45, %v189_v57  ;;  %v200_v2 = vstv %s897_s20  ;;  %s985_s16 = sld [smem:[#allocation2 + $0x31]]  ;;  %s991_s17 = sld [smem:[#allocation2 + $0x68]] }
  0x44   :  { %v171_v63 = vadd.f32 %v170_v55, %v144_v47  ;;  %v175_v0 = vadd.f32 %v174_v56, %v148_v48  ;;  %v212_v3 = vadd.f32 %v211_v58, %v208_v60  ;;  %v219_v4 = vmul.f32 %v218_v62, %v808_v27  ;;  %s993_s18 = sld [smem:[#allocation2 + $0x41]]  ;;  %s1003_s19 = sld [smem:[#allocation2 + $0x12]] }
  0x45   :  { %v231_v5 = vstv %s903_s21  ;;  %v234_v6 = vstv %s905_s22  ;;  %v194_v7 = vmax.f32 %v193_v1, 0.0  ;;  %v237_v9 = vstv %s907_s23  ;;  %s997_s15 = sld [smem:[#allocation2 + $0x69]]  ;;  %s1005_s20 = sld [smem:[#allocation2 + $0x52]] }
  0x46   :  { %v232_v8 = vmul.f32 %v231_v5, %v786_v16  ;;  %v241_v10 = vstv %s909_s24  ;;  %v216_v11 = vadd.f32 %v215_v61, %v212_v3  ;;  %v223_v12 = vstv %s915_s25  ;;  %s1007_s21 = sld [smem:[#allocation2 + $0x22]]  ;;  %s1023_s25 = sld [smem:[#allocation2 + $0x6b]] }
  0x47   :  { %v238_v13 = vmul.f32 %v237_v9, %v791_v19  ;;  %v245_v14 = vstv %s917_s26  ;;  %v197_v15 = vmul.f32 %v196_v59, %v194_v7  ;;  %v201_v17 = vmul.f32 %v200_v2, %v194_v7  ;;  %s1009_s22 = sld [smem:[#allocation2 + $0x32]]  ;;  %s1025_s26 = sld [smem:[#allocation2 + $0x13]] }
  0x48   :  { %v235_v18 = vadd.f32 %v234_v6, %v232_v8  ;;  %v242_v20 = vmul.f32 %v241_v10, %v799_v23  ;;  %v220_v21 = vadd.f32 %v219_v4, %v216_v11  ;;  %v227_v22 = vstv %s923_s27  ;;  %s1015_s23 = sld [smem:[#allocation2 + $0x6a]]  ;;  %s1028_s27 = sld [smem:[#allocation2 + $0x53]] }
  0x49   :  { %v246_v24 = vmul.f32 %v245_v14, %v808_v27  ;;  %v258_v25 = vstv %s925_s28  ;;  %v198_v26 = vadd.f32 %v197_v15, %v171_v63  ;;  %v202_v28 = vadd.f32 %v201_v17, %v175_v0  ;;  %s1017_s24 = sld [smem:[#allocation2 + $0x42]]  ;;  %s1033_s28 = sld [smem:[#allocation2 + $0x23]] }
  0x4a   :  { %v239_v30 = vadd.f32 %v238_v13, %v235_v18  ;;  %v259_v29 = vmul.f32 %v258_v25, %v786_v16  ;;  %v221_v31 = vmax.f32 %v220_v21, 0.0  ;;  %v261_v32 = vstv %s928_s0  ;;  %s1035_s0 = sld [smem:[#allocation2 + $0x33]] }
  0x4b   :  { %v264_v33 = vstv %s933_s29  ;;  %v268_v34 = vstv %s935_s30  ;;  %v250_v41 = vstv %s941_s3  ;;  %v272_v42 = vstv %s943_s4  ;;  %s1041_s29 = sld [smem:[#allocation2 + $0x6c]]  ;;  %s1043_s30 = sld [smem:[#allocation2 + $0x43]] }
  0x4c   :  { %v243_v35 = vadd.f32 %v242_v20, %v239_v30  ;;  %v262_v36 = vadd.f32 %v261_v32, %v259_v29  ;;  %v265_v37 = vmul.f32 %v264_v33, %v791_v19  ;;  %v269_v38 = vmul.f32 %v268_v34, %v799_v23  ;;  %s1048_s3 = sld [smem:[#allocation2 + $0x6d]]  ;;  %s1053_s4 = sld [smem:[#allocation2 + $0x14]] }
  0x4d   :  { %v224_v39 = vmul.f32 %v223_v12, %v221_v31  ;;  %v228_v40 = vmul.f32 %v227_v22, %v221_v31  ;;  %v254_v44 = vstv %s948_s5  ;;  %v273_v46 = vmul.f32 %v272_v42, %v808_v27  ;;  %s1055_s5 = sld [smem:[#allocation2 + $0x54]] }
  0x4e   :  { %v247_v43 = vadd.f32 %v246_v24, %v243_v35  ;;  %v266_v45 = vadd.f32 %v265_v37, %v262_v36  ;;  %v285_v49 = vstv %s953_s6  ;;  %v288_v50 = vstv %s955_s7  ;;  %s1058_s6 = sld [smem:[#allocation2 + $0x6e]]  ;;  %s1060_s7 = sld [smem:[#allocation2 + $0x24]] }
  0x4f   :  { %v225_v47 = vadd.f32 %v224_v39, %v198_v26  ;;  %v229_v48 = vadd.f32 %v228_v40, %v202_v28  ;;  %v286_v53 = vmul.f32 %v285_v49, %v786_v16  ;;  %v291_v54 = vstv %s960_s9  ;;  %s1067_s9 = sld [smem:[#allocation2 + $0x44]] }
  0x50   :  { %v248_v51 = vmax.f32 %v247_v43, 0.0  ;;  %v270_v52 = vadd.f32 %v269_v38, %v266_v45  ;;  %v277_v55 = vstv %s958_s8  ;;  %v292_v56 = vmul.f32 %v291_v54, %v791_v19  ;;  %s1065_s8 = sld [smem:[#allocation2 + $0x34]] }
  0x51   :  { %v295_v57 = vstv %s965_s10  ;;  %v299_v58 = vstv %s967_s1  ;;  %v289_v62 = vadd.f32 %v288_v50, %v286_v53  ;;  %v281_v63 = vstv %s973_s11  ;;  %s1073_s10 = sld [smem:[#allocation2 + $0x6f]]  ;;  %s1075_s1 = sld [smem:[#allocation2 + $0x15]] }
  0x52   :  { %v251_v59 = vmul.f32 %v250_v41, %v248_v51  ;;  %v255_v60 = vmul.f32 %v254_v44, %v248_v51  ;;  %v274_v61 = vadd.f32 %v273_v46, %v270_v52  ;;  %v296_v0 = vmul.f32 %v295_v57, %v799_v23  ;;  %s1079_s11 = sld [smem:[#allocation2 + $0x55]] }
  0x53   :  { %v300_v1 = vmul.f32 %v299_v58, %v808_v27  ;;  %v312_v2 = vstv %s975_s12  ;;  %v293_v6 = vadd.f32 %v292_v56, %v289_v62  ;;  %v315_v8 = vstv %s979_s13  ;;  %s1083_s12 = sld [smem:[#allocation2 + $0x25]] }
  0x54   :  { %v252_v3 = vadd.f32 %v251_v59, %v225_v47  ;;  %v256_v4 = vadd.f32 %v255_v60, %v229_v48  ;;  %v275_v5 = vmax.f32 %v274_v61, 0.0  ;;  %v313_v7 = vmul.f32 %v312_v2, %v786_v16  ;;  %s1085_s13 = sld [smem:[#allocation2 + $0x35]] }
  0x55   :  { %v318_v9 = vstv %s983_s14  ;;  %v322_v10 = vstv %s985_s16  ;;  %v297_v13 = vadd.f32 %v296_v0, %v293_v6  ;;  %v304_v15 = vstv %s991_s17  ;;  %s1091_s14 = sld [smem:[#allocation2 + $0x70]]  ;;  %s1093_s16 = sld [smem:[#allocation2 + $0x45]] }
  0x56   :  { %v278_v11 = vmul.f32 %v277_v55, %v275_v5  ;;  %v282_v12 = vmul.f32 %v281_v63, %v275_v5  ;;  %v319_v14 = vmul.f32 %v318_v9, %v791_v19  ;;  %v316_v17 = vadd.f32 %v315_v8, %v313_v7  ;;  %s1097_s17 = sld [smem:[#allocation2 + $0x71]] }
  0x57   :  { %v323_v18 = vmul.f32 %v322_v10, %v799_v23  ;;  %v326_v20 = vstv %s993_s18  ;;  %v301_v24 = vadd.f32 %v300_v1, %v297_v13  ;;  %v308_v25 = vstv %s997_s15  ;;  %s1103_s18 = sld [smem:[#allocation2 + $0x16]] }
  0x58   :  { %v279_v21 = vadd.f32 %v278_v11, %v252_v3  ;;  %v283_v22 = vadd.f32 %v282_v12, %v256_v4  ;;  %v320_v26 = vadd.f32 %v319_v14, %v316_v17  ;;  %v327_v28 = vmul.f32 %v326_v20, %v808_v27  ;;  %s1105_s15 = sld [smem:[#allocation2 + $0x56]] }
  0x59   :  { %v339_v30 = vstv %s1003_s19  ;;  %v342_v29 = vstv %s1005_s20  ;;  %v302_v31 = vmax.f32 %v301_v24, 0.0  ;;  %v345_v33 = vstv %s1007_s21  ;;  %s1107_s19 = sld [smem:[#allocation2 + $0x26]]  ;;  %s1115_s21 = sld [smem:[#allocation2 + $0x72]] }
  0x5a   :  { %v340_v32 = vmul.f32 %v339_v30, %v786_v16  ;;  %v349_v34 = vstv %s1009_s22  ;;  %v324_v35 = vadd.f32 %v323_v18, %v320_v26  ;;  %v331_v36 = vstv %s1015_s23  ;;  %s1109_s20 = sld [smem:[#allocation2 + $0x36]]  ;;  %s1123_s23 = sld [smem:[#allocation2 + $0x73]] }
  0x5b   :  { %v346_v37 = vmul.f32 %v345_v33, %v791_v19  ;;  %v353_v38 = vstv %s1017_s24  ;;  %v305_v39 = vmul.f32 %v304_v15, %v302_v31  ;;  %v309_v40 = vmul.f32 %v308_v25, %v302_v31  ;;  %s1117_s22 = sld [smem:[#allocation2 + $0x46]]  ;;  %s1125_s24 = sld [smem:[#allocation2 + $0x17]] }
  0x5c   :  { %v343_v41 = vadd.f32 %v342_v29, %v340_v32  ;;  %v350_v42 = vmul.f32 %v349_v34, %v799_v23  ;;  %v328_v43 = vadd.f32 %v327_v28, %v324_v35  ;;  %v335_v44 = vstv %s1023_s25  ;;  %s1128_s25 = sld [smem:[#allocation2 + $0x57]] }
  0x5d   :  { %v354_v45 = vmul.f32 %v353_v38, %v808_v27  ;;  %v366_v46 = vstv %s1025_s26  ;;  %v306_v47 = vadd.f32 %v305_v39, %v279_v21  ;;  %v310_v48 = vadd.f32 %v309_v40, %v283_v22  ;;  %s1133_s26 = sld [smem:[#allocation2 + $0x27]] }
  0x5e   :  { %v347_v49 = vadd.f32 %v346_v37, %v343_v41  ;;  %v367_v50 = vmul.f32 %v366_v46, %v786_v16  ;;  %v329_v51 = vmax.f32 %v328_v43, 0.0  ;;  %v369_v52 = vstv %s1028_s27  ;;  %s1135_s27 = sld [smem:[#allocation2 + $0x37]] }
  0x5f   :  { %v372_v53 = vstv %s1033_s28  ;;  %v376_v54 = vstv %s1035_s0  ;;  %v358_v61 = vstv %s1041_s29  ;;  %v380_v62 = vstv %s1043_s30  ;;  %s1141_s28 = sld [smem:[#allocation2 + $0x47]]  ;;  %s1149_s0 = sld [smem:[#allocation2 + $0x74]] }
  0x60   :  { %v351_v55 = vadd.f32 %v350_v42, %v347_v49  ;;  %v370_v56 = vadd.f32 %v369_v52, %v367_v50  ;;  %v373_v57 = vmul.f32 %v372_v53, %v791_v19  ;;  %v377_v58 = vmul.f32 %v376_v54, %v799_v23  ;;  %s1151_s29 = sld [smem:[#allocation2 + $0x75]]  ;;  %s640_s30 = sld [smem:[#allocation2 + $0x76]] }
  0x61   :  { %v332_v59 = vmul.f32 %v331_v36, %v329_v51  ;;  %v336_v60 = vmul.f32 %v335_v44, %v329_v51  ;;  %v362_v0 = vstv %s1048_s3  ;;  %v381_v2 = vmul.f32 %v380_v62, %v808_v27  ;;  %s641_s3 = sld [smem:[#allocation2 + $0x77]] }
  0x62   :  { %v355_v63 = vadd.f32 %v354_v45, %v351_v55  ;;  %v374_v1 = vadd.f32 %v373_v57, %v370_v56  ;;  %v393_v5 = vstv %s1053_s4  ;;  %v396_v6 = vstv %s1055_s5  ;;  %s709_s4 = smov [#allocation7]  }
  0x63   :  { %v333_v3 = vadd.f32 %v332_v59, %v306_v47  ;;  %v337_v4 = vadd.f32 %v336_v60, %v310_v48  ;;  %v394_v9 = vmul.f32 %v393_v5, %v786_v16  ;;  %v399_v10 = vstv %s1060_s7  ;;  %s508_s5 = sshll.u32 %s709_s4, 4  ;;  %s509_s5 = int_to_ptr.vmem [resolvable:$true] %s508_s5 }
  0x64   :  { %v356_v7 = vmax.f32 %v355_v63, 0.0  ;;  %v378_v8 = vadd.f32 %v377_v58, %v374_v1  ;;  %v385_v11 = vstv %s1058_s6  ;;  %v400_v12 = vmul.f32 %v399_v10, %v791_v19  ;;  %s679_s6 = scalar_lea.vmem %s509_s5, 256  ;;  %p684_p12 = scmp.lt.s32.totalorder %s509_s5, %s509_s5 }
  0x65   :  { %v403_v13 = vstv %s1065_s8  ;;  %v407_v14 = vstv %s1067_s9  ;;  %v397_v20 = vadd.f32 %v396_v6, %v394_v9  ;;  %v389_v21 = vstv %s1073_s10  ;;  %p680_p11 = scmp.ne.s32.totalorder %s509_s5, %s679_s6  ;;  %p685_p13 = scmp.lt.s32.totalorder %s679_s6, %s679_s6 }
  0x66   :  { %v359_v15 = vmul.f32 %v358_v61, %v356_v7  ;;  %v363_v17 = vmul.f32 %v362_v0, %v356_v7  ;;  %v382_v18 = vadd.f32 %v381_v2, %v378_v8  ;;  %v404_v22 = vmul.f32 %v403_v13, %v799_v23 }
  0x67   :  { %v408_v24 = vmul.f32 %v407_v14, %v808_v27  ;;  %v420_v25 = vstv %s1075_s1  ;;  %v401_v29 = vadd.f32 %v400_v12, %v397_v20  ;;  %v423_v32 = vstv %s1079_s11  ;;  %p686_p0 = por %p685_p13, %p684_p12 }
  0x68   :  { %v360_v26 = vadd.f32 %v359_v15, %v333_v3  ;;  %v364_v28 = vadd.f32 %v363_v17, %v337_v4  ;;  %v383_v30 = vmax.f32 %v382_v18, 0.0  ;;  %v421_v31 = vmul.f32 %v420_v25, %v786_v16 }
  0x69   :  { %v426_v33 = vstv %s1083_s12  ;;  %v430_v34 = vstv %s1085_s13  ;;  %v405_v37 = vadd.f32 %v404_v22, %v401_v29  ;;  %v412_v39 = vstv %s1091_s14  ;;  %p687_p1 = pnand %p686_p0, %p680_p11 }
  0x6a   :  { %v386_v35 = vmul.f32 %v385_v11, %v383_v30  ;;  %v390_v36 = vmul.f32 %v389_v21, %v383_v30  ;;  %v427_v38 = vmul.f32 %v426_v33, %v791_v19  ;;  %v424_v40 = vadd.f32 %v423_v32, %v421_v31 }
  0x6b   :  { %v431_v41 = vmul.f32 %v430_v34, %v799_v23  ;;  %v434_v42 = vstv %s1093_s16  ;;  %v409_v45 = vadd.f32 %v408_v24, %v405_v37  ;;  %v416_v46 = vstv %s1097_s17 }
  0x6c   :  { %v387_v43 = vadd.f32 %v386_v35, %v360_v26  ;;  %v391_v44 = vadd.f32 %v390_v36, %v364_v28  ;;  %v428_v47 = vadd.f32 %v427_v38, %v424_v40  ;;  %v435_v48 = vmul.f32 %v434_v42, %v808_v27 }
  0x6d   :  { %v447_v49 = vstv %s1103_s18  ;;  %v450_v50 = vstv %s1105_s15  ;;  %v410_v51 = vmax.f32 %v409_v45, 0.0  ;;  %v453_v53 = vstv %s1107_s19 }
  0x6e   :  { %v448_v52 = vmul.f32 %v447_v49, %v786_v16  ;;  %v457_v54 = vstv %s1109_s20  ;;  %v432_v55 = vadd.f32 %v431_v41, %v428_v47  ;;  %v439_v56 = vstv %s1115_s21 }
  0x6f   :  { %v454_v57 = vmul.f32 %v453_v53, %v791_v19  ;;  %v461_v58 = vstv %s1117_s22  ;;  %v413_v59 = vmul.f32 %v412_v39, %v410_v51  ;;  %v417_v60 = vmul.f32 %v416_v46, %v410_v51 }
  0x70   :  { %v451_v61 = vadd.f32 %v450_v50, %v448_v52  ;;  %v458_v62 = vmul.f32 %v457_v54, %v799_v23  ;;  %v436_v63 = vadd.f32 %v435_v48, %v432_v55  ;;  %v443_v0 = vstv %s1123_s23 }
  0x71   :  { %v462_v1 = vmul.f32 %v461_v58, %v808_v27  ;;  %v474_v2 = vstv %s1125_s24  ;;  %v414_v3 = vadd.f32 %v413_v59, %v387_v43  ;;  %v418_v4 = vadd.f32 %v417_v60, %v391_v44 }
  0x72   :  { %v455_v5 = vadd.f32 %v454_v57, %v451_v61  ;;  %v475_v6 = vmul.f32 %v474_v2, %v786_v16  ;;  %v437_v7 = vmax.f32 %v436_v63, 0.0  ;;  %v477_v8 = vstv %s1128_s25 }
  0x73   :  { %v480_v9 = vstv %s1133_s26  ;;  %v484_v10 = vstv %s1135_s27  ;;  %v488_v18 = vstv %s1141_s28  ;;  %v466_v22 = vstv %s1149_s0 }
  0x74   :  { %v459_v11 = vadd.f32 %v458_v62, %v455_v5  ;;  %v478_v12 = vadd.f32 %v477_v8, %v475_v6  ;;  %v481_v13 = vmul.f32 %v480_v9, %v791_v19  ;;  %v485_v14 = vmul.f32 %v484_v10, %v799_v23 }
  0x75   :  { %v440_v15 = vmul.f32 %v439_v56, %v437_v7  ;;  %v444_v17 = vmul.f32 %v443_v0, %v437_v7  ;;  %v489_v16 = vmul.f32 %v488_v18, %v808_v27  ;;  %v470_v24 = vstv %s1151_s29 }
  0x76   :  { %v463_v20 = vadd.f32 %v462_v1, %v459_v11  ;;  %v482_v21 = vadd.f32 %v481_v13, %v478_v12  ;;  %v493_v33 = vstv %s640_s30  ;;  %v497_v19 = vstv %s641_s3 }
  0x77   :  { %v441_v25 = vadd.f32 %v440_v15, %v414_v3  ;;  %v445_v26 = vadd.f32 %v444_v17, %v418_v4 }
  0x78   :  { %v464_v28 = vmax.f32 %v463_v20, 0.0  ;;  %v486_v30 = vadd.f32 %v485_v14, %v482_v21 }
  0x7a   :  { %v467_v29 = vmul.f32 %v466_v22, %v464_v28  ;;  %v471_v31 = vmul.f32 %v470_v24, %v464_v28  ;;  %v490_v32 = vadd.f32 %v489_v16, %v486_v30 }
  0x7c   :  { %v468_v34 = vadd.f32 %v467_v29, %v441_v25  ;;  %v472_v23 = vadd.f32 %v471_v31, %v445_v26  ;;  %v491_v35 = vmax.f32 %v490_v32, 0.0 }
  0x7e   :  { %v494_v36 = vmul.f32 %v493_v33, %v491_v35  ;;  %v498_v37 = vmul.f32 %v497_v19, %v491_v35 }
  0x80   :  { %v495_v38 = vadd.f32 %v494_v36, %v468_v34  ;;  %v499_v27 = vadd.f32 %v498_v37, %v472_v23 }
  0x82   :  { %500 = vst [vmem:[#allocation7] sm:$0xff] %v495_v38  ;;  %502 = vst [vmem:[#allocation7 + $0x8] sm:$0xff] %v499_v27 }
  0x83   :  { %690 = shalt.err (!%p687_p1)
}
  0x84   :  { %s691_s9 = scalar_lea.hbm %s1181_s2, 256 }
  0x85   :  { %p692_p2 = scmp.ne.s32.totalorder %s1181_s2, %s691_s9  ;;  %p695_p3 = scmp.lt.u32.totalorder %s691_s9, %s1181_s2 }
  0x87   :  { %p697_p4 = pnand %p695_p3, %p692_p2 }
  0x89   :  { %700 = shalt.err (!%p697_p4)
}
  0x8a   :  { %s710_s13 = smov 128   ;;  %s711_s14 = smov 8  }
  0x8b   :  { %514 = dma.vmem_to_hbm [thread:$0]  %s509_s5, 256, %s1181_s2, [#allocation4], %s710_s13, %s710_s13, %s711_s14  }
  0x8c   :  { %705 = dma.done.wait [#allocation4], 256  }
  0x8d   :  { %706 = vsyncadd [#allocation4], 4294967040 }
  0x8e   :  { %518 = vsyncpa [#allocation3], 1 }
  0x8f   :  { %519 = vsyncpa [#allocation4], 1 }
  0x90   :  { %520 = vsyncpa [#allocation5], 1 }

</bundles_post_ra>
